<compile_context>
chip_gen: v5e
topology: v5e:2x2
jax: 0.10.0
libtpu: 0.0.40
codegen_flags: <defaults>
</compile_context>

<pallas_src>
import functools

import jax
import jax.numpy as jnp
from jax import lax
from jax.experimental import pallas as pl
from jax.experimental.pallas import tpu as pltpu

_LOG_CLAMP = -100.0  # torch F.binary_cross_entropy clamps log terms at -100.


def _round_up(n, m):
    return ((n + m - 1) // m) * m


def _vae_loss_kernel(loss_type, recon_ref, x_ref, mu_ref, lv_ref, out_ref):
    """One batch tile -> one lane-dense (1, 8, 128) partial-sum block.

    lane 0: sum over the tile of the per-element reconstruction loss
    lane 1: sum over the tile of (1 + log_var - mu^2 - exp(log_var))
    """
    recon = recon_ref[...].astype(jnp.float32)
    x = x_ref[...].astype(jnp.float32)
    mu = mu_ref[...].astype(jnp.float32)
    log_var = lv_ref[...].astype(jnp.float32)

    if loss_type == 'mse':
        diff = recon - x
        recon_partial = jnp.sum(diff * diff)
    elif loss_type == 'bce':
        # Matches torch.nn.functional.binary_cross_entropy (log terms clamped at -100).
        log_r = jnp.maximum(jnp.log(recon), _LOG_CLAMP)
        log_1mr = jnp.maximum(jnp.log(1.0 - recon), _LOG_CLAMP)
        recon_partial = jnp.sum(-(x * log_r + (1.0 - x) * log_1mr))
    else:
        raise ValueError(f"unsupported loss_type: {loss_type}")

    # KL inner sum; the -0.5 factor is applied once in the wrapper.
    kl_partial = jnp.sum(1.0 + log_var - mu * mu - jnp.exp(log_var))

    lane = lax.broadcasted_iota(jnp.int32, out_ref.shape, 2)
    blk = jnp.where(lane == 0, recon_partial, 0.0)
    blk = jnp.where(lane == 1, kl_partial, blk)
    out_ref[...] = blk


def vae_loss(recon_x, x, mu, log_var, *, loss_type='mse', reduction='sum',
             tile_b=512):
    """Returns (recon_loss, kl_divergence), matching VAELoss.forward."""
    if recon_x.shape != x.shape or mu.shape != log_var.shape:
        raise ValueError("shape mismatch between inputs")
    if recon_x.shape[0] != mu.shape[0]:
        raise ValueError("batch mismatch between recon_x/x and mu/log_var")
    # TODO(synk): reduction='none' (per-element loss tensor) is not implemented; the
    # module default is 'sum'.
    if reduction not in ('sum', 'mean'):
        raise ValueError(f"unsupported reduction: {reduction}")

    b, d = recon_x.shape
    _, l = mu.shape

    # Batch tile: multiple of 8 (f32 sublane), clamped so tiny batches use one tile.
    tile_b = max(8, min(int(tile_b), _round_up(b, 8)))
    tile_b = _round_up(tile_b, 8)
    padded_b = _round_up(b, tile_b)
    if padded_b != b:
        pad = ((0, padded_b - b), (0, 0))
        recon_x = jnp.pad(recon_x, pad)
        x = jnp.pad(x, pad)
        mu = jnp.pad(mu, pad)
        log_var = jnp.pad(log_var, pad)
    num_tiles = padded_b // tile_b

    kernel = functools.partial(_vae_loss_kernel, loss_type)
    partials = pl.pallas_call(
        kernel,
        out_shape=jax.ShapeDtypeStruct((num_tiles, 8, 128), jnp.float32),
        grid=(num_tiles,),
        in_specs=[
            pl.BlockSpec((tile_b, d), lambda i: (i, 0)),
            pl.BlockSpec((tile_b, d), lambda i: (i, 0)),
            pl.BlockSpec((tile_b, l), lambda i: (i, 0)),
            pl.BlockSpec((tile_b, l), lambda i: (i, 0)),
        ],
        out_specs=pl.BlockSpec((1, 8, 128), lambda i: (i, 0, 0)),
        compiler_params=pltpu.CompilerParams(
            dimension_semantics=("parallel",)),
    )(recon_x, x, mu, log_var)

    recon_loss = jnp.sum(partials[:, 0, 0])
    kl_divergence = -0.5 * jnp.sum(partials[:, 0, 1])
    if reduction == 'mean':
        recon_loss = recon_loss / (b * d)
    return recon_loss, kl_divergence


if __name__ == "__main__":
    BATCH = 32
    INPUT_DIM = 64
    LATENT_DIM = 16
    TILE_B = 8  # deliberately small so the demo exercises a 4-step batch grid

    root = jax.random.PRNGKey(0)
    k_r, k_x, k_mu, k_lv = jax.random.split(root, 4)

    recon_x = jax.nn.sigmoid(jax.random.normal(k_r, (BATCH, INPUT_DIM), jnp.float32))
    x = jax.random.uniform(k_x, (BATCH, INPUT_DIM), jnp.float32)
    mu = jax.random.normal(k_mu, (BATCH, LATENT_DIM), jnp.float32)
    log_var = 0.5 * jax.random.normal(k_lv, (BATCH, LATENT_DIM), jnp.float32)

    # Default config: loss_type='mse', reduction='sum'.
    recon_loss, kl = vae_loss(recon_x, x, mu, log_var,
                              loss_type='mse', reduction='sum', tile_b=TILE_B)
    jax.block_until_ready((recon_loss, kl))

    # Pure-JAX reference of the same math (torch semantics).
    ref_recon = jnp.sum((recon_x - x) ** 2)
    ref_kl = -0.5 * jnp.sum(1.0 + log_var - mu ** 2 - jnp.exp(log_var))
    assert recon_loss.shape == () and kl.shape == ()
    assert jnp.allclose(recon_loss, ref_recon, rtol=1e-5, atol=1e-2)
    assert jnp.allclose(kl, ref_kl, rtol=1e-5, atol=1e-2)

    # Exercise the 'bce' branch as well (inputs are in (0, 1), so no clamping triggers).
    bce_loss, kl2 = vae_loss(recon_x, x, mu, log_var,
                             loss_type='bce', reduction='sum', tile_b=TILE_B)
    jax.block_until_ready((bce_loss, kl2))
    ref_bce = jnp.sum(-(x * jnp.log(recon_x) + (1.0 - x) * jnp.log(1.0 - recon_x)))
    assert jnp.allclose(bce_loss, ref_bce, rtol=1e-5, atol=1e-2)
    assert jnp.allclose(kl2, ref_kl, rtol=1e-5, atol=1e-2)

    print("KERNEL_OK")
</pallas_src>

<mosaic_0001>
module attributes {stable_mosaic.version = 11 : i64} {
  func.func @_vae_loss_kernel(%arg0: i32, %arg1: memref<8x64xf32, #tpu.memory_space<vmem>>, %arg2: memref<8x64xf32, #tpu.memory_space<vmem>>, %arg3: memref<8x16xf32, #tpu.memory_space<vmem>>, %arg4: memref<8x16xf32, #tpu.memory_space<vmem>>, %arg5: memref<1x8x128xf32, #tpu.memory_space<vmem>>) attributes {dimension_semantics = [#tpu.dimension_semantics<parallel>], iteration_bounds = array<i64: 4>, scalar_prefetch = 0 : i64, scratch_operands = 0 : i64, tpu.core_type = #tpu.core_type<tc>, window_params = [{transform_indices = @transform_0, window_bounds = array<i64: 8, 64>}, {transform_indices = @transform_1, window_bounds = array<i64: 8, 64>}, {transform_indices = @transform_2, window_bounds = array<i64: 8, 16>}, {transform_indices = @transform_3, window_bounds = array<i64: 8, 16>}, {transform_indices = @transform_4, window_bounds = array<i64: 1, 8, 128>}]} {
    %c0 = arith.constant 0 : index
    %c0_0 = arith.constant 0 : index
    %0 = vector.load %arg1[%c0, %c0_0] : memref<8x64xf32, #tpu.memory_space<vmem>>, vector<8x64xf32>
    %c0_1 = arith.constant 0 : index
    %c0_2 = arith.constant 0 : index
    %1 = vector.load %arg2[%c0_1, %c0_2] : memref<8x64xf32, #tpu.memory_space<vmem>>, vector<8x64xf32>
    %c0_3 = arith.constant 0 : index
    %c0_4 = arith.constant 0 : index
    %2 = vector.load %arg3[%c0_3, %c0_4] : memref<8x16xf32, #tpu.memory_space<vmem>>, vector<8x16xf32>
    %c0_5 = arith.constant 0 : index
    %c0_6 = arith.constant 0 : index
    %3 = vector.load %arg4[%c0_5, %c0_6] : memref<8x16xf32, #tpu.memory_space<vmem>>, vector<8x16xf32>
    %4 = arith.subf %0, %1 : vector<8x64xf32>
    %5 = arith.mulf %4, %4 : vector<8x64xf32>
    %6 = vector.shape_cast %5 : vector<8x64xf32> to vector<1x8x64xf32>
    %cst = arith.constant dense<0.000000e+00> : vector<1xf32>
    %7 = vector.multi_reduction <add>, %6, %cst [1, 2] : vector<1x8x64xf32> to vector<1xf32>
    %8 = vector.shape_cast %7 : vector<1xf32> to vector<1x1x1xf32>
    %9 = vector.extract %8[0, 0, 0] : f32 from vector<1x1x1xf32>
    %cst_7 = arith.constant 1.000000e+00 : f32
    %10 = vector.broadcast %cst_7 : f32 to vector<8x16xf32>
    %11 = arith.addf %10, %3 : vector<8x16xf32>
    %12 = arith.mulf %2, %2 : vector<8x16xf32>
    %13 = arith.subf %11, %12 : vector<8x16xf32>
    %14 = math.exp %3 : vector<8x16xf32>
    %15 = arith.subf %13, %14 : vector<8x16xf32>
    %16 = vector.shape_cast %15 : vector<8x16xf32> to vector<1x8x16xf32>
    %cst_8 = arith.constant dense<0.000000e+00> : vector<1xf32>
    %17 = vector.multi_reduction <add>, %16, %cst_8 [1, 2] : vector<1x8x16xf32> to vector<1xf32>
    %18 = vector.shape_cast %17 : vector<1xf32> to vector<1x1x1xf32>
    %19 = vector.extract %18[0, 0, 0] : f32 from vector<1x1x1xf32>
    %20 = tpu.iota {dimensions = array<i32: 2>} : vector<1x8x128xi32>
    %c0_i32 = arith.constant 0 : i32
    %21 = vector.broadcast %c0_i32 : i32 to vector<1x8x128xi32>
    %22 = arith.cmpi eq, %20, %21 : vector<1x8x128xi32>
    %cst_9 = arith.constant 0.000000e+00 : f32
    %23 = vector.broadcast %9 : f32 to vector<1x8x128xf32>
    %24 = vector.broadcast %cst_9 : f32 to vector<1x8x128xf32>
    %25 = arith.select %22, %23, %24 : vector<1x8x128xi1>, vector<1x8x128xf32>
    %c1_i32 = arith.constant 1 : i32
    %26 = vector.broadcast %c1_i32 : i32 to vector<1x8x128xi32>
    %27 = arith.cmpi eq, %20, %26 : vector<1x8x128xi32>
    %28 = vector.broadcast %19 : f32 to vector<1x8x128xf32>
    %29 = arith.select %27, %28, %25 : vector<1x8x128xi1>, vector<1x8x128xf32>
    %c0_10 = arith.constant 0 : index
    %c0_11 = arith.constant 0 : index
    %c0_12 = arith.constant 0 : index
    %30 = vector.load %arg5[%c0_10, %c0_11, %c0_12] : memref<1x8x128xf32, #tpu.memory_space<vmem>>, vector<1x8x128xf32>
    tpu.vector_store %arg5[%c0_10, %c0_11, %c0_12], %29 {strides = array<i32>} : memref<1x8x128xf32, #tpu.memory_space<vmem>>, vector<1x8x128xf32>,
    return
  }
  func.func @transform_0(%arg0: i32) -> (i32, i32) {
    %c0_i32 = arith.constant 0 : i32
    %c0_i32_0 = arith.constant 0 : i32
    return %arg0, %c0_i32 : i32, i32
  }
  func.func @transform_1(%arg0: i32) -> (i32, i32) {
    %c0_i32 = arith.constant 0 : i32
    %c0_i32_0 = arith.constant 0 : i32
    return %arg0, %c0_i32 : i32, i32
  }
  func.func @transform_2(%arg0: i32) -> (i32, i32) {
    %c0_i32 = arith.constant 0 : i32
    %c0_i32_0 = arith.constant 0 : i32
    return %arg0, %c0_i32 : i32, i32
  }
  func.func @transform_3(%arg0: i32) -> (i32, i32) {
    %c0_i32 = arith.constant 0 : i32
    %c0_i32_0 = arith.constant 0 : i32
    return %arg0, %c0_i32 : i32, i32
  }
  func.func @transform_4(%arg0: i32) -> (i32, i32, i32) {
    %c0_i32 = arith.constant 0 : i32
    %c0_i32_0 = arith.constant 0 : i32
    %c0_i32_1 = arith.constant 0 : i32
    return %arg0, %c0_i32, %c0_i32_0 : i32, i32, i32
  }
}

</mosaic_0001>

<bundles_post_ra>
// kernel: tpu_custom_call.1
= control target key start
LH: loop header
LB: loop body
LE: loop exit
PB: predicated region body
PF: predicated region fallthrough
CT: control target
= control target key end

     0   :  { %9 = vsyncpa [#allocation3], 0  ;;  %s639_s0 = inlined_call_operand.vmem [shape: f32[32,64], index: 0, kind: input, shape index: {}]   ;;  %s640_s1 = inlined_call_operand.vmem [shape: f32[32,64], index: 1, kind: input, shape index: {}]   ;;  %s641_s2 = inlined_call_operand.vmem [shape: f32[32,16], index: 2, kind: input, shape index: {}]   ;;  %s642_s3 = inlined_call_operand.vmem [shape: f32[32,16], index: 3, kind: input, shape index: {}]   ;;  %s643_s4 = inlined_call_operand.hbm [shape: f32[4,8,128], index: 4, kind: output, shape index: {}]  }
   0x1   :  { %11 = vsyncpa [#allocation3 + $0x1], 0  ;;  %s545_s15 = smov 0   ;;  %s547_s16 = smov 0  }
   0x2   :  { %s549_s17 = smov 0   ;;  %s551_s18 = smov 0  }
   0x3 LB: > { %s566_s19 = sadd.s32 4294967295, %s518_s18   ;;  %s398_s20 = sadd.s32 4294967294, %s518_s18   ;;  %s518_s18 = sphi %s551_s18, %s649_s18   ;;  %s514_s17 = sphi %s549_s17, %s648_s17   ;;  %s510_s16 = sphi %s547_s16, %s647_s16   ;;  %s506_s15 = sphi %s545_s15, %s646_s15  }
   0x4   : > { %s570_s21 = sadd.s32 1, %s518_s18   ;;  %s128_s22 = sadd.s32 1, %s514_s17 }
   0x5   : > { %s125_s23 = ssub.s32 %s518_s18, %s570_s21  ;;  %p138_p0 = scmp.ne.s32.totalorder %s514_s17, %s510_s16 }
   0x6   : > { %p126_p1 = scmp.eq.s32.totalorder %s125_s23, 0  ;;  %p139_p2 = scmp.eq.s32.totalorder %s566_s19, 3 }
   0x7   : > { %p144_p3 = scmp.ne.s32.totalorder %s510_s16, %s506_s15  ;;  %p145_p4 = scmp.eq.s32.totalorder %s398_s20, 3 }
   0x8   : > { %s581_s24 = scalar_select %p126_p1, %s514_s17, %s128_s22  }
   0x9   : > { %p583_p5 = por %p139_p2, %p138_p0  ;;  %p587_p6 = por %p145_p4, %p144_p3 }
   0xa   : > { %p401_p7 = scmp.ge.s32.totalorder %s518_s18, 1  ;;  %p191_p8 = scmp.lt.s32.totalorder %s518_s18, 5 }
   0xc   : > { %p192_p9 = pnand %p401_p7, %p191_p8 }
   0xd   : > { %p228_p10 = scmp.lt.s32.totalorder (!%p192_p9), %s566_s19, 3  ;;  %s225_s20 = sand.u32 (!%p192_p9), 1, %s510_s16  }
   0xe   : > { %195 = sbr.rel (%p192_p9) target bundleno = 222 (0xde), region = 36  ;;  %s402_s22 = sshll.u32 (!%p192_p9), %s225_s20, 3 }
   0xf   : > { %s408_s23 = sshll.u32 (!%p192_p9), %s566_s19, 3  ;;  %s476_s13 = scalar_lea.hbm (!%p192_p9), %s643_s4, 32 }
  0x10   : > { %s298_s30 = scalar_lea.hbm (!%p192_p9), %s643_s4, %s408_s23 }
  0x11   : > { %s302_s7 = sshll.u32 (!%p192_p9), %s298_s30, 4  ;;  %s303_s7 = int_to_ptr.hbm [resolvable:$true] %s302_s7 }
  0x12   : > { %s470_s9 = sshra.s32 (!%p192_p9), %s303_s7, 4  ;;  %s471_s9 = int_to_ptr.hbm [resolvable:$true] %s470_s9 }
  0x13   : > { %s229_s27 = scalar_select %p228_p10, %s566_s19, 3  ;;  %vm250_vm0 = vcmask 523264   ;;  %vm267_vm1 = vcmask 130048   ;;  %v278_v28 = vlaneseq }
  0x14   : > { %s288_s19 = scalar_lea.sflag [#allocation3], %s225_s20  ;;  %s472_s10 = scalar_lea.hbm %s471_s9, 8 }
  0x15   : > { %s403_s28 = sshll.u32 %s229_s27, 3  ;;  %v279_v29 = vand.u32 127, %v278_v28  ;;  %p473_p11 = scmp.ne.s32.totalorder %s471_s9, %s472_s10 }
  0x16   : > { %s231_s5 = scalar_lea.vmem %s639_s0, %s403_s28  ;;  %s235_s8 = scalar_lea.vmem %s640_s1, %s403_s28 }
  0x17   : > { %v244_v0 = vld [vmem:[%s231_s5] sm:$0xff]  ;;  %s239_s11 = scalar_lea.vmem %s641_s2, %s403_s28  ;;  %s243_s14 = scalar_lea.vmem %s642_s3, %s403_s28  ;;  %vm280_vm2 = vcmp.eq.s32.totalorder %v279_v29, 0  ;;  %vm283_vm3 = vcmp.eq.s32.totalorder %v279_v29, 1 }
  0x18   : > { %v245_v1 = vld [vmem:[%s235_s8] sm:$0xff]  ;;  %s227_s5 = scalar_lea.vmem [#allocation2], %s402_s22  ;;  %p474_p12 = pnand %p473_p11, %p583_p5 }
  0x19   : > { %v248_v2 = vsub.f32 %v244_v0, %v245_v1  ;;  %v246_v3 = vld [vmem:[%s239_s11] sm:$0xff]  ;;  %s300_s6 = sshll.u32 %s227_s5, 4  ;;  %p477_p0 = scmp.lt.s32.totalorder %s471_s9, %s643_s4  ;;  %s301_s6 = int_to_ptr.vmem [resolvable:$true] %s300_s6 }
  0x1a   : > { %v247_v4 = vld [vmem:[%s243_s14] sm:$0xff]  ;;  %v262_v8 = vmul.f32 %v246_v3, %v246_v3  ;;  %p475_p13 = pneg %p474_p12  ;;  %p478_p1 = scmp.lt.s32.totalorder %s476_s13, %s472_s10 }
  0x1b   : > { %v264_v5 = vmul.f32 1.442695, %v247_v4  ;;  %v249_v6 = vmul.f32 %v248_v2, %v248_v2  ;;  %v261_v7 = vadd.f32 1.0, %v247_v4 }
  0x1c   : > { %p479_p2 = por %p478_p1, %p477_p0 }
  0x1d   : > { %454 = vpow2.f32 %v264_v5  ;;  %v251_v9 = vsel %vm250_vm0, %v249_v6, 0.0  ;;  %v263_v10 = vsub.f32 %v261_v7, %v262_v8 }
  0x1e   : > { %252 = vadd.xlane.f32.xlu0 %v251_v9  ;;  %p480_p3 = pnand %p479_p2, %p475_p13 }
  0x23   : > { %v455_v11 = vpop.eup %454 }
  0x24   : > { %v266_v12 = vsub.f32 %v263_v10, %v455_v11 }
  0x26   : > { %v268_v13 = vsel %vm267_vm1, %v266_v12, 0.0 }
  0x27   : > { %269 = vadd.xlane.f32.xlu0 %v268_v13 }
  0x91   : > { %v253_v14 = vpop.xlane.xlu0 %252 }
  0x92   : > { %v254_v15 = vrot.slane %v253_v14, 4 }
  0x94   : > { %v255_v16 = vadd.f32 %v254_v15, %v253_v14 }
  0x96   : > { %v256_v17 = vrot.slane %v255_v16, 2 }
  0x98   : > { %v257_v18 = vadd.f32 %v256_v17, %v255_v16 }
  0x9a   : > { %v270_v19 = vpop.xlane.xlu0 %269  ;;  %v258_v21 = vrot.slane %v257_v18, 1 }
  0x9b   : > { %v271_v20 = vrot.slane %v270_v19, 4 }
  0x9c   : > { %v259_v23 = vadd.f32 %v258_v21, %v257_v18 }
  0x9d   : > { %v272_v22 = vadd.f32 %v271_v20, %v270_v19 }
  0x9e   : > { %411 = vpush %v259_v23 }
  0x9f   : > { %v273_v24 = vrot.slane %v272_v22, 2 }
  0xa1   : > { %v274_v25 = vadd.f32 %v273_v24, %v272_v22 }
  0xa3   : > { %v275_v26 = vrot.slane %v274_v25, 1 }
  0xa5   : > { %v276_v27 = vadd.f32 %v275_v26, %v274_v25 }
  0xa7   : > { %413 = vpush %v276_v27 }
  0xcf   : > { %s412_s27 = spop %411 }
  0xd0   : > { %v281_v30 = vstv %s412_s27 }
  0xd1   : > { %v282_v31 = vsel %vm280_vm2, %v281_v30, 0.0 }
  0xd8   : > { %s414_s8 = spop %413 }
  0xd9   : > { %v284_v32 = vstv %s414_s8 }
  0xda   : > { %v285_v33 = vsel %vm283_vm3, %v284_v32, %v282_v31 }
  0xdb   : > { %286 = vst [vmem:[%s227_s5] sm:$0xff] %v285_v33 }
  0xdc   : > { %483 = shalt.err (!%p480_p3)
}
  0xdd   : > { %415 = dma.vmem_to_hbm [thread:$0]  (%p583_p5), %s301_s6, 128, %s303_s7, %s288_s19  }
  0xde PF: > { %p421_p4 = scmp.ge.s32.totalorder %s518_s18, 2  ;;  %s314_s20 = sand.u32 1, %s506_s15  }
  0xdf   : > { %s315_s23 = scalar_lea.sflag [#allocation3], %s314_s20 }
  0xe0   : > { %p418_p7 = pnand %p421_p4, %p587_p6 }
  0xe2   : > { %p419_p8 = pneg %p418_p7 }
  0xe4   : > { %501 = dma.done.wait (%p419_p8), %s315_s23, 128  }
  0xe5   : > { %503 = vsyncadd (%p419_p8), %s315_s23, 4294967168  ;;  %p14_p9 = scmp.ge.s32.totalorder %s570_s21, 6   ;;  %s646_s15 = smov %s510_s16 }
  0xe6   : > { %s647_s16 = smov %s514_s17  ;;  %s648_s17 = smov %s581_s24 }
  0xe7   : > { %s649_s18 = smov %s570_s21  ;;  %16 = sbr.rel (!%p14_p9) target bundleno = 3 (0x3), region = 80 }
  0xec   :  { %321 = vsyncpa [#allocation3], 1 }
  0xed   :  { %323 = vsyncpa [#allocation3 + $0x1], 1 }

</bundles_post_ra>
